<compile_context>
chip_gen: v5e
topology: v5e:2x2
jax: 0.10.0
libtpu: 0.0.40
codegen_flags: <defaults>
</compile_context>

<pallas_src>
import jax
import jax.numpy as jnp
from jax import lax
from jax.experimental import pallas as pl
from jax.experimental.pallas import tpu as pltpu

NEG_SLOPE = 0.01                      # nn.LeakyReLU default negative_slope
STATE, H1, H2, ACT = 4, 16, 16, 3     # fc1: 4->16, fc2: 16->16, fc3: 16->3

CHUNK = 128                           # lanes per compute chunk (one vreg width)
MAX_CPB = 16                          # chunks per grid step (16 * 128 = 2048 samples)
PLANE_ROWS = 16                       # sublane rows per packed parameter plane

# Plane layout of the packed parameter slab (each plane is (16, 128) f32,
# lane-replicated; unused rows are zero):
#   planes [0, 4)   : W1 columns 0..3        plane 4  : b1
#   planes [5, 21)  : W2 columns 0..15       plane 21 : b2
#   planes [22, 38) : W3 columns 0..15       plane 38 : b3   (only rows 0:3 used)
L1_P0 = 0
L2_P0 = L1_P0 + STATE + 1
L3_P0 = L2_P0 + H1 + 1
N_PLANES = L3_P0 + H2 + 1             # 39


def dqn_kernel(x_ref, p_ref, o_ref):
    """x_ref: (cpb, 4, 128) states; p_ref: (39, 16, 128) params; o_ref: (cpb, 3, 128)."""
    cpb = x_ref.shape[0]

    def leaky(v):                                   # valid for 0 < slope < 1
        return jnp.maximum(v, NEG_SLOPE * v)

    def layer(p0, n_out, k_dim, act):
        # acc = b + sum_k W[:, k] * act[k, :].  Weight/bias operands are full-width
        # vector loads of lane-replicated planes; only the act-row sublane broadcast
        # remains on the XLU path.
        acc = p_ref[p0 + k_dim, 0:n_out, :]         # lane-replicated bias plane
        for k in range(k_dim):                      # static, tiny K (4 / 16 / 16)
            acc = acc + p_ref[p0 + k, 0:n_out, :] * act[k:k + 1, :]
        return acc

    def body(c, carry):
        x = x_ref[c]                                # (4, 128)
        h1 = leaky(layer(L1_P0, H1, STATE, x))      # (16, 128)
        h2 = leaky(layer(L2_P0, H2, H1, h1))        # (16, 128)
        z = layer(L3_P0, ACT, H2, h2)               # (3, 128) logits
        # LogSoftmax over the 3 action rows (numerically stable, 1 vreg per chunk).
        m = jnp.max(z, axis=0, keepdims=True)
        lse = jnp.log(jnp.sum(jnp.exp(z - m), axis=0, keepdims=True)) + m
        o_ref[c] = (z - lse).astype(o_ref.dtype)
        return carry

    lax.fori_loop(0, cpb, body, None, unroll=2 if cpb % 2 == 0 else 1)


def pack_params(w1, b1, w2, b2, w3, b3):
    """Pack PyTorch-layout params (W: (out, in), b: (out,)) into a lane-replicated
    (39, 16, 128) f32 slab: one (16, 128) plane per weight column / bias vector."""
    def planes(w, b):
        n_out = w.shape[0]
        cols = jnp.concatenate([w.T, b[None, :]], axis=0)           # (k+1, n_out)
        cols = jnp.pad(cols, ((0, 0), (0, PLANE_ROWS - n_out)))     # rows -> 16
        return jnp.broadcast_to(cols[:, :, None],
                                (cols.shape[0], PLANE_ROWS, CHUNK))  # lane-replicate
    return jnp.concatenate(
        [planes(w1, b1), planes(w2, b2), planes(w3, b3)], axis=0
    ).astype(jnp.float32)


def dqn_forward(x, packed):
    """x: (B, 4) float32, packed: (39, 16, 128) param slab.  Returns (B, 3) log-probs."""
    B = x.shape[0]
    nc = pl.cdiv(B, CHUNK)                    # number of 128-sample chunks
    cpb = min(MAX_CPB, nc)                    # chunks per grid step
    n_blocks = pl.cdiv(nc, cpb)
    nc_pad = n_blocks * cpb
    b_pad = nc_pad * CHUNK

    # Chunked, batch-on-lanes layout (nc_pad, 4, 128); padded rows are zeros and the
    # corresponding (finite) outputs are sliced off below.
    xc = jnp.pad(x, ((0, b_pad - B), (0, 0))).reshape(nc_pad, CHUNK, STATE)
    xc = xc.transpose(0, 2, 1)

    out_c = pl.pallas_call(
        dqn_kernel,
        out_shape=jax.ShapeDtypeStruct((nc_pad, ACT, CHUNK), jnp.float32),
        grid=(n_blocks,),
        in_specs=[
            pl.BlockSpec((cpb, STATE, CHUNK), lambda i: (i, 0, 0)),            # states
            pl.BlockSpec((N_PLANES, PLANE_ROWS, CHUNK), lambda i: (0, 0, 0)),  # params (resident)
        ],
        out_specs=pl.BlockSpec((cpb, ACT, CHUNK), lambda i: (i, 0, 0)),
        compiler_params=pltpu.CompilerParams(
            dimension_semantics=("parallel",),
            vmem_limit_bytes=16 * 1024 * 1024),
    )(xc, packed)

    # Back to the PyTorch (B, 3) interface.  Callers that keep the chunked layout
    # (or only need argmax over actions) can skip this transpose entirely.
    return out_c.transpose(0, 2, 1).reshape(b_pad, ACT)[:B]


def init_params(key):
    """Deterministic synthetic init (PyTorch-like uniform fan-in scaling)."""
    ks = jax.random.split(key, 6)

    def lin(kw, kb, fan_in, fan_out):
        bound = fan_in ** -0.5
        w = jax.random.uniform(kw, (fan_out, fan_in), jnp.float32, -bound, bound)
        b = jax.random.uniform(kb, (fan_out,), jnp.float32, -bound, bound)
        return w, b

    w1, b1 = lin(ks[0], ks[1], STATE, H1)
    w2, b2 = lin(ks[2], ks[3], H1, H2)
    w3, b3 = lin(ks[4], ks[5], H2, ACT)
    return w1, b1, w2, b2, w3, b3


def dqn_reference(x, w1, b1, w2, b2, w3, b3):
    """Pure-JAX reference (PyTorch semantics: y = x @ W.T + b)."""
    h1 = jax.nn.leaky_relu(x @ w1.T + b1, NEG_SLOPE)
    h2 = jax.nn.leaky_relu(h1 @ w2.T + b2, NEG_SLOPE)
    return jax.nn.log_softmax(h2 @ w3.T + b3, axis=1)


if __name__ == "__main__":
    key = jax.random.PRNGKey(0)
    k_param, k_x = jax.random.split(key)

    params = init_params(k_param)
    packed = pack_params(*params)

    x = jax.random.normal(k_x, (8, STATE), dtype=jnp.float32)   # batch=8, state_dim=4

    fwd = jax.jit(dqn_forward)
    out = jax.block_until_ready(fwd(x, packed))

    ref = dqn_reference(x, *params)
    assert out.shape == (8, ACT)
    assert jnp.allclose(out, ref, atol=1e-5, rtol=1e-5), "mismatch vs JAX reference"

    print("KERNEL_OK")
</pallas_src>

<mosaic_0001>
module attributes {stable_mosaic.version = 11 : i64} {
  func.func @dqn_kernel(%arg0: i32, %arg1: memref<1x4x128xf32, #tpu.memory_space<vmem>>, %arg2: memref<39x16x128xf32, #tpu.memory_space<vmem>>, %arg3: memref<1x3x128xf32, #tpu.memory_space<vmem>>) attributes {dimension_semantics = [#tpu.dimension_semantics<parallel>], iteration_bounds = array<i64: 1>, scalar_prefetch = 0 : i64, scratch_operands = 0 : i64, tpu.core_type = #tpu.core_type<tc>, window_params = [{transform_indices = @transform_0, window_bounds = array<i64: 1, 4, 128>}, {pipeline_mode = #tpu.pipeline_mode<synchronous>, transform_indices = @transform_1, window_bounds = array<i64: 39, 16, 128>}, {transform_indices = @transform_2, window_bounds = array<i64: 1, 3, 128>}]} {
    %c0_i32 = arith.constant 0 : i32
    %0 = arith.index_cast %c0_i32 : i32 to index
    %c0 = arith.constant 0 : index
    %c0_0 = arith.constant 0 : index
    %1 = vector.load %arg1[%0, %c0, %c0_0] : memref<1x4x128xf32, #tpu.memory_space<vmem>>, vector<1x4x128xf32>
    %2 = vector.shape_cast %1 : vector<1x4x128xf32> to vector<4x128xf32>
    %c4 = arith.constant 4 : index
    %c0_1 = arith.constant 0 : index
    %c0_2 = arith.constant 0 : index
    %3 = vector.load %arg2[%c4, %c0_1, %c0_2] : memref<39x16x128xf32, #tpu.memory_space<vmem>>, vector<1x16x128xf32>
    %4 = vector.shape_cast %3 : vector<1x16x128xf32> to vector<16x128xf32>
    %c0_3 = arith.constant 0 : index
    %c0_4 = arith.constant 0 : index
    %c0_5 = arith.constant 0 : index
    %5 = vector.load %arg2[%c0_3, %c0_4, %c0_5] : memref<39x16x128xf32, #tpu.memory_space<vmem>>, vector<1x16x128xf32>
    %6 = vector.shape_cast %5 : vector<1x16x128xf32> to vector<16x128xf32>
    %7 = vector.extract_strided_slice %2 {offsets = [0, 0], sizes = [1, 128], strides = [1, 1]} : vector<4x128xf32> to vector<1x128xf32>
    %8 = vector.broadcast %7 : vector<1x128xf32> to vector<16x128xf32>
    %9 = arith.mulf %6, %8 : vector<16x128xf32>
    %10 = arith.addf %4, %9 : vector<16x128xf32>
    %c1 = arith.constant 1 : index
    %c0_6 = arith.constant 0 : index
    %c0_7 = arith.constant 0 : index
    %11 = vector.load %arg2[%c1, %c0_6, %c0_7] : memref<39x16x128xf32, #tpu.memory_space<vmem>>, vector<1x16x128xf32>
    %12 = vector.shape_cast %11 : vector<1x16x128xf32> to vector<16x128xf32>
    %13 = vector.extract_strided_slice %2 {offsets = [1, 0], sizes = [1, 128], strides = [1, 1]} : vector<4x128xf32> to vector<1x128xf32>
    %14 = vector.broadcast %13 : vector<1x128xf32> to vector<16x128xf32>
    %15 = arith.mulf %12, %14 : vector<16x128xf32>
    %16 = arith.addf %10, %15 : vector<16x128xf32>
    %c2 = arith.constant 2 : index
    %c0_8 = arith.constant 0 : index
    %c0_9 = arith.constant 0 : index
    %17 = vector.load %arg2[%c2, %c0_8, %c0_9] : memref<39x16x128xf32, #tpu.memory_space<vmem>>, vector<1x16x128xf32>
    %18 = vector.shape_cast %17 : vector<1x16x128xf32> to vector<16x128xf32>
    %19 = vector.extract_strided_slice %2 {offsets = [2, 0], sizes = [1, 128], strides = [1, 1]} : vector<4x128xf32> to vector<1x128xf32>
    %20 = vector.broadcast %19 : vector<1x128xf32> to vector<16x128xf32>
    %21 = arith.mulf %18, %20 : vector<16x128xf32>
    %22 = arith.addf %16, %21 : vector<16x128xf32>
    %c3 = arith.constant 3 : index
    %c0_10 = arith.constant 0 : index
    %c0_11 = arith.constant 0 : index
    %23 = vector.load %arg2[%c3, %c0_10, %c0_11] : memref<39x16x128xf32, #tpu.memory_space<vmem>>, vector<1x16x128xf32>
    %24 = vector.shape_cast %23 : vector<1x16x128xf32> to vector<16x128xf32>
    %25 = vector.extract_strided_slice %2 {offsets = [3, 0], sizes = [1, 128], strides = [1, 1]} : vector<4x128xf32> to vector<1x128xf32>
    %26 = vector.broadcast %25 : vector<1x128xf32> to vector<16x128xf32>
    %27 = arith.mulf %24, %26 : vector<16x128xf32>
    %28 = arith.addf %22, %27 : vector<16x128xf32>
    %cst = arith.constant 0.00999999977 : f32
    %29 = vector.broadcast %cst : f32 to vector<16x128xf32>
    %30 = arith.mulf %29, %28 : vector<16x128xf32>
    %31 = arith.maximumf %28, %30 : vector<16x128xf32>
    %c21 = arith.constant 21 : index
    %c0_12 = arith.constant 0 : index
    %c0_13 = arith.constant 0 : index
    %32 = vector.load %arg2[%c21, %c0_12, %c0_13] : memref<39x16x128xf32, #tpu.memory_space<vmem>>, vector<1x16x128xf32>
    %33 = vector.shape_cast %32 : vector<1x16x128xf32> to vector<16x128xf32>
    %c5 = arith.constant 5 : index
    %c0_14 = arith.constant 0 : index
    %c0_15 = arith.constant 0 : index
    %34 = vector.load %arg2[%c5, %c0_14, %c0_15] : memref<39x16x128xf32, #tpu.memory_space<vmem>>, vector<1x16x128xf32>
    %35 = vector.shape_cast %34 : vector<1x16x128xf32> to vector<16x128xf32>
    %36 = vector.extract_strided_slice %31 {offsets = [0, 0], sizes = [1, 128], strides = [1, 1]} : vector<16x128xf32> to vector<1x128xf32>
    %37 = vector.broadcast %36 : vector<1x128xf32> to vector<16x128xf32>
    %38 = arith.mulf %35, %37 : vector<16x128xf32>
    %39 = arith.addf %33, %38 : vector<16x128xf32>
    %c6 = arith.constant 6 : index
    %c0_16 = arith.constant 0 : index
    %c0_17 = arith.constant 0 : index
    %40 = vector.load %arg2[%c6, %c0_16, %c0_17] : memref<39x16x128xf32, #tpu.memory_space<vmem>>, vector<1x16x128xf32>
    %41 = vector.shape_cast %40 : vector<1x16x128xf32> to vector<16x128xf32>
    %42 = vector.extract_strided_slice %31 {offsets = [1, 0], sizes = [1, 128], strides = [1, 1]} : vector<16x128xf32> to vector<1x128xf32>
    %43 = vector.broadcast %42 : vector<1x128xf32> to vector<16x128xf32>
    %44 = arith.mulf %41, %43 : vector<16x128xf32>
    %45 = arith.addf %39, %44 : vector<16x128xf32>
    %c7 = arith.constant 7 : index
    %c0_18 = arith.constant 0 : index
    %c0_19 = arith.constant 0 : index
    %46 = vector.load %arg2[%c7, %c0_18, %c0_19] : memref<39x16x128xf32, #tpu.memory_space<vmem>>, vector<1x16x128xf32>
    %47 = vector.shape_cast %46 : vector<1x16x128xf32> to vector<16x128xf32>
    %48 = vector.extract_strided_slice %31 {offsets = [2, 0], sizes = [1, 128], strides = [1, 1]} : vector<16x128xf32> to vector<1x128xf32>
    %49 = vector.broadcast %48 : vector<1x128xf32> to vector<16x128xf32>
    %50 = arith.mulf %47, %49 : vector<16x128xf32>
    %51 = arith.addf %45, %50 : vector<16x128xf32>
    %c8 = arith.constant 8 : index
    %c0_20 = arith.constant 0 : index
    %c0_21 = arith.constant 0 : index
    %52 = vector.load %arg2[%c8, %c0_20, %c0_21] : memref<39x16x128xf32, #tpu.memory_space<vmem>>, vector<1x16x128xf32>
    %53 = vector.shape_cast %52 : vector<1x16x128xf32> to vector<16x128xf32>
    %54 = vector.extract_strided_slice %31 {offsets = [3, 0], sizes = [1, 128], strides = [1, 1]} : vector<16x128xf32> to vector<1x128xf32>
    %55 = vector.broadcast %54 : vector<1x128xf32> to vector<16x128xf32>
    %56 = arith.mulf %53, %55 : vector<16x128xf32>
    %57 = arith.addf %51, %56 : vector<16x128xf32>
    %c9 = arith.constant 9 : index
    %c0_22 = arith.constant 0 : index
    %c0_23 = arith.constant 0 : index
    %58 = vector.load %arg2[%c9, %c0_22, %c0_23] : memref<39x16x128xf32, #tpu.memory_space<vmem>>, vector<1x16x128xf32>
    %59 = vector.shape_cast %58 : vector<1x16x128xf32> to vector<16x128xf32>
    %60 = vector.extract_strided_slice %31 {offsets = [4, 0], sizes = [1, 128], strides = [1, 1]} : vector<16x128xf32> to vector<1x128xf32>
    %61 = vector.broadcast %60 : vector<1x128xf32> to vector<16x128xf32>
    %62 = arith.mulf %59, %61 : vector<16x128xf32>
    %63 = arith.addf %57, %62 : vector<16x128xf32>
    %c10 = arith.constant 10 : index
    %c0_24 = arith.constant 0 : index
    %c0_25 = arith.constant 0 : index
    %64 = vector.load %arg2[%c10, %c0_24, %c0_25] : memref<39x16x128xf32, #tpu.memory_space<vmem>>, vector<1x16x128xf32>
    %65 = vector.shape_cast %64 : vector<1x16x128xf32> to vector<16x128xf32>
    %66 = vector.extract_strided_slice %31 {offsets = [5, 0], sizes = [1, 128], strides = [1, 1]} : vector<16x128xf32> to vector<1x128xf32>
    %67 = vector.broadcast %66 : vector<1x128xf32> to vector<16x128xf32>
    %68 = arith.mulf %65, %67 : vector<16x128xf32>
    %69 = arith.addf %63, %68 : vector<16x128xf32>
    %c11 = arith.constant 11 : index
    %c0_26 = arith.constant 0 : index
    %c0_27 = arith.constant 0 : index
    %70 = vector.load %arg2[%c11, %c0_26, %c0_27] : memref<39x16x128xf32, #tpu.memory_space<vmem>>, vector<1x16x128xf32>
    %71 = vector.shape_cast %70 : vector<1x16x128xf32> to vector<16x128xf32>
    %72 = vector.extract_strided_slice %31 {offsets = [6, 0], sizes = [1, 128], strides = [1, 1]} : vector<16x128xf32> to vector<1x128xf32>
    %73 = vector.broadcast %72 : vector<1x128xf32> to vector<16x128xf32>
    %74 = arith.mulf %71, %73 : vector<16x128xf32>
    %75 = arith.addf %69, %74 : vector<16x128xf32>
    %c12 = arith.constant 12 : index
    %c0_28 = arith.constant 0 : index
    %c0_29 = arith.constant 0 : index
    %76 = vector.load %arg2[%c12, %c0_28, %c0_29] : memref<39x16x128xf32, #tpu.memory_space<vmem>>, vector<1x16x128xf32>
    %77 = vector.shape_cast %76 : vector<1x16x128xf32> to vector<16x128xf32>
    %78 = vector.extract_strided_slice %31 {offsets = [7, 0], sizes = [1, 128], strides = [1, 1]} : vector<16x128xf32> to vector<1x128xf32>
    %79 = vector.broadcast %78 : vector<1x128xf32> to vector<16x128xf32>
    %80 = arith.mulf %77, %79 : vector<16x128xf32>
    %81 = arith.addf %75, %80 : vector<16x128xf32>
    %c13 = arith.constant 13 : index
    %c0_30 = arith.constant 0 : index
    %c0_31 = arith.constant 0 : index
    %82 = vector.load %arg2[%c13, %c0_30, %c0_31] : memref<39x16x128xf32, #tpu.memory_space<vmem>>, vector<1x16x128xf32>
    %83 = vector.shape_cast %82 : vector<1x16x128xf32> to vector<16x128xf32>
    %84 = vector.extract_strided_slice %31 {offsets = [8, 0], sizes = [1, 128], strides = [1, 1]} : vector<16x128xf32> to vector<1x128xf32>
    %85 = vector.broadcast %84 : vector<1x128xf32> to vector<16x128xf32>
    %86 = arith.mulf %83, %85 : vector<16x128xf32>
    %87 = arith.addf %81, %86 : vector<16x128xf32>
    %c14 = arith.constant 14 : index
    %c0_32 = arith.constant 0 : index
    %c0_33 = arith.constant 0 : index
    %88 = vector.load %arg2[%c14, %c0_32, %c0_33] : memref<39x16x128xf32, #tpu.memory_space<vmem>>, vector<1x16x128xf32>
    %89 = vector.shape_cast %88 : vector<1x16x128xf32> to vector<16x128xf32>
    %90 = vector.extract_strided_slice %31 {offsets = [9, 0], sizes = [1, 128], strides = [1, 1]} : vector<16x128xf32> to vector<1x128xf32>
    %91 = vector.broadcast %90 : vector<1x128xf32> to vector<16x128xf32>
    %92 = arith.mulf %89, %91 : vector<16x128xf32>
    %93 = arith.addf %87, %92 : vector<16x128xf32>
    %c15 = arith.constant 15 : index
    %c0_34 = arith.constant 0 : index
    %c0_35 = arith.constant 0 : index
    %94 = vector.load %arg2[%c15, %c0_34, %c0_35] : memref<39x16x128xf32, #tpu.memory_space<vmem>>, vector<1x16x128xf32>
    %95 = vector.shape_cast %94 : vector<1x16x128xf32> to vector<16x128xf32>
    %96 = vector.extract_strided_slice %31 {offsets = [10, 0], sizes = [1, 128], strides = [1, 1]} : vector<16x128xf32> to vector<1x128xf32>
    %97 = vector.broadcast %96 : vector<1x128xf32> to vector<16x128xf32>
    %98 = arith.mulf %95, %97 : vector<16x128xf32>
    %99 = arith.addf %93, %98 : vector<16x128xf32>
    %c16 = arith.constant 16 : index
    %c0_36 = arith.constant 0 : index
    %c0_37 = arith.constant 0 : index
    %100 = vector.load %arg2[%c16, %c0_36, %c0_37] : memref<39x16x128xf32, #tpu.memory_space<vmem>>, vector<1x16x128xf32>
    %101 = vector.shape_cast %100 : vector<1x16x128xf32> to vector<16x128xf32>
    %102 = vector.extract_strided_slice %31 {offsets = [11, 0], sizes = [1, 128], strides = [1, 1]} : vector<16x128xf32> to vector<1x128xf32>
    %103 = vector.broadcast %102 : vector<1x128xf32> to vector<16x128xf32>
    %104 = arith.mulf %101, %103 : vector<16x128xf32>
    %105 = arith.addf %99, %104 : vector<16x128xf32>
    %c17 = arith.constant 17 : index
    %c0_38 = arith.constant 0 : index
    %c0_39 = arith.constant 0 : index
    %106 = vector.load %arg2[%c17, %c0_38, %c0_39] : memref<39x16x128xf32, #tpu.memory_space<vmem>>, vector<1x16x128xf32>
    %107 = vector.shape_cast %106 : vector<1x16x128xf32> to vector<16x128xf32>
    %108 = vector.extract_strided_slice %31 {offsets = [12, 0], sizes = [1, 128], strides = [1, 1]} : vector<16x128xf32> to vector<1x128xf32>
    %109 = vector.broadcast %108 : vector<1x128xf32> to vector<16x128xf32>
    %110 = arith.mulf %107, %109 : vector<16x128xf32>
    %111 = arith.addf %105, %110 : vector<16x128xf32>
    %c18 = arith.constant 18 : index
    %c0_40 = arith.constant 0 : index
    %c0_41 = arith.constant 0 : index
    %112 = vector.load %arg2[%c18, %c0_40, %c0_41] : memref<39x16x128xf32, #tpu.memory_space<vmem>>, vector<1x16x128xf32>
    %113 = vector.shape_cast %112 : vector<1x16x128xf32> to vector<16x128xf32>
    %114 = vector.extract_strided_slice %31 {offsets = [13, 0], sizes = [1, 128], strides = [1, 1]} : vector<16x128xf32> to vector<1x128xf32>
    %115 = vector.broadcast %114 : vector<1x128xf32> to vector<16x128xf32>
    %116 = arith.mulf %113, %115 : vector<16x128xf32>
    %117 = arith.addf %111, %116 : vector<16x128xf32>
    %c19 = arith.constant 19 : index
    %c0_42 = arith.constant 0 : index
    %c0_43 = arith.constant 0 : index
    %118 = vector.load %arg2[%c19, %c0_42, %c0_43] : memref<39x16x128xf32, #tpu.memory_space<vmem>>, vector<1x16x128xf32>
    %119 = vector.shape_cast %118 : vector<1x16x128xf32> to vector<16x128xf32>
    %120 = vector.extract_strided_slice %31 {offsets = [14, 0], sizes = [1, 128], strides = [1, 1]} : vector<16x128xf32> to vector<1x128xf32>
    %121 = vector.broadcast %120 : vector<1x128xf32> to vector<16x128xf32>
    %122 = arith.mulf %119, %121 : vector<16x128xf32>
    %123 = arith.addf %117, %122 : vector<16x128xf32>
    %c20 = arith.constant 20 : index
    %c0_44 = arith.constant 0 : index
    %c0_45 = arith.constant 0 : index
    %124 = vector.load %arg2[%c20, %c0_44, %c0_45] : memref<39x16x128xf32, #tpu.memory_space<vmem>>, vector<1x16x128xf32>
    %125 = vector.shape_cast %124 : vector<1x16x128xf32> to vector<16x128xf32>
    %126 = vector.extract_strided_slice %31 {offsets = [15, 0], sizes = [1, 128], strides = [1, 1]} : vector<16x128xf32> to vector<1x128xf32>
    %127 = vector.broadcast %126 : vector<1x128xf32> to vector<16x128xf32>
    %128 = arith.mulf %125, %127 : vector<16x128xf32>
    %129 = arith.addf %123, %128 : vector<16x128xf32>
    %cst_46 = arith.constant 0.00999999977 : f32
    %130 = vector.broadcast %cst_46 : f32 to vector<16x128xf32>
    %131 = arith.mulf %130, %129 : vector<16x128xf32>
    %132 = arith.maximumf %129, %131 : vector<16x128xf32>
    %c38 = arith.constant 38 : index
    %c0_47 = arith.constant 0 : index
    %c0_48 = arith.constant 0 : index
    %133 = vector.load %arg2[%c38, %c0_47, %c0_48] : memref<39x16x128xf32, #tpu.memory_space<vmem>>, vector<1x3x128xf32>
    %134 = vector.shape_cast %133 : vector<1x3x128xf32> to vector<3x128xf32>
    %c22 = arith.constant 22 : index
    %c0_49 = arith.constant 0 : index
    %c0_50 = arith.constant 0 : index
    %135 = vector.load %arg2[%c22, %c0_49, %c0_50] : memref<39x16x128xf32, #tpu.memory_space<vmem>>, vector<1x3x128xf32>
    %136 = vector.shape_cast %135 : vector<1x3x128xf32> to vector<3x128xf32>
    %137 = vector.extract_strided_slice %132 {offsets = [0, 0], sizes = [1, 128], strides = [1, 1]} : vector<16x128xf32> to vector<1x128xf32>
    %138 = vector.broadcast %137 : vector<1x128xf32> to vector<3x128xf32>
    %139 = arith.mulf %136, %138 : vector<3x128xf32>
    %140 = arith.addf %134, %139 : vector<3x128xf32>
    %c23 = arith.constant 23 : index
    %c0_51 = arith.constant 0 : index
    %c0_52 = arith.constant 0 : index
    %141 = vector.load %arg2[%c23, %c0_51, %c0_52] : memref<39x16x128xf32, #tpu.memory_space<vmem>>, vector<1x3x128xf32>
    %142 = vector.shape_cast %141 : vector<1x3x128xf32> to vector<3x128xf32>
    %143 = vector.extract_strided_slice %132 {offsets = [1, 0], sizes = [1, 128], strides = [1, 1]} : vector<16x128xf32> to vector<1x128xf32>
    %144 = vector.broadcast %143 : vector<1x128xf32> to vector<3x128xf32>
    %145 = arith.mulf %142, %144 : vector<3x128xf32>
    %146 = arith.addf %140, %145 : vector<3x128xf32>
    %c24 = arith.constant 24 : index
    %c0_53 = arith.constant 0 : index
    %c0_54 = arith.constant 0 : index
    %147 = vector.load %arg2[%c24, %c0_53, %c0_54] : memref<39x16x128xf32, #tpu.memory_space<vmem>>, vector<1x3x128xf32>
    %148 = vector.shape_cast %147 : vector<1x3x128xf32> to vector<3x128xf32>
    %149 = vector.extract_strided_slice %132 {offsets = [2, 0], sizes = [1, 128], strides = [1, 1]} : vector<16x128xf32> to vector<1x128xf32>
    %150 = vector.broadcast %149 : vector<1x128xf32> to vector<3x128xf32>
    %151 = arith.mulf %148, %150 : vector<3x128xf32>
    %152 = arith.addf %146, %151 : vector<3x128xf32>
    %c25 = arith.constant 25 : index
    %c0_55 = arith.constant 0 : index
    %c0_56 = arith.constant 0 : index
    %153 = vector.load %arg2[%c25, %c0_55, %c0_56] : memref<39x16x128xf32, #tpu.memory_space<vmem>>, vector<1x3x128xf32>
    %154 = vector.shape_cast %153 : vector<1x3x128xf32> to vector<3x128xf32>
    %155 = vector.extract_strided_slice %132 {offsets = [3, 0], sizes = [1, 128], strides = [1, 1]} : vector<16x128xf32> to vector<1x128xf32>
    %156 = vector.broadcast %155 : vector<1x128xf32> to vector<3x128xf32>
    %157 = arith.mulf %154, %156 : vector<3x128xf32>
    %158 = arith.addf %152, %157 : vector<3x128xf32>
    %c26 = arith.constant 26 : index
    %c0_57 = arith.constant 0 : index
    %c0_58 = arith.constant 0 : index
    %159 = vector.load %arg2[%c26, %c0_57, %c0_58] : memref<39x16x128xf32, #tpu.memory_space<vmem>>, vector<1x3x128xf32>
    %160 = vector.shape_cast %159 : vector<1x3x128xf32> to vector<3x128xf32>
    %161 = vector.extract_strided_slice %132 {offsets = [4, 0], sizes = [1, 128], strides = [1, 1]} : vector<16x128xf32> to vector<1x128xf32>
    %162 = vector.broadcast %161 : vector<1x128xf32> to vector<3x128xf32>
    %163 = arith.mulf %160, %162 : vector<3x128xf32>
    %164 = arith.addf %158, %163 : vector<3x128xf32>
    %c27 = arith.constant 27 : index
    %c0_59 = arith.constant 0 : index
    %c0_60 = arith.constant 0 : index
    %165 = vector.load %arg2[%c27, %c0_59, %c0_60] : memref<39x16x128xf32, #tpu.memory_space<vmem>>, vector<1x3x128xf32>
    %166 = vector.shape_cast %165 : vector<1x3x128xf32> to vector<3x128xf32>
    %167 = vector.extract_strided_slice %132 {offsets = [5, 0], sizes = [1, 128], strides = [1, 1]} : vector<16x128xf32> to vector<1x128xf32>
    %168 = vector.broadcast %167 : vector<1x128xf32> to vector<3x128xf32>
    %169 = arith.mulf %166, %168 : vector<3x128xf32>
    %170 = arith.addf %164, %169 : vector<3x128xf32>
    %c28 = arith.constant 28 : index
    %c0_61 = arith.constant 0 : index
    %c0_62 = arith.constant 0 : index
    %171 = vector.load %arg2[%c28, %c0_61, %c0_62] : memref<39x16x128xf32, #tpu.memory_space<vmem>>, vector<1x3x128xf32>
    %172 = vector.shape_cast %171 : vector<1x3x128xf32> to vector<3x128xf32>
    %173 = vector.extract_strided_slice %132 {offsets = [6, 0], sizes = [1, 128], strides = [1, 1]} : vector<16x128xf32> to vector<1x128xf32>
    %174 = vector.broadcast %173 : vector<1x128xf32> to vector<3x128xf32>
    %175 = arith.mulf %172, %174 : vector<3x128xf32>
    %176 = arith.addf %170, %175 : vector<3x128xf32>
    %c29 = arith.constant 29 : index
    %c0_63 = arith.constant 0 : index
    %c0_64 = arith.constant 0 : index
    %177 = vector.load %arg2[%c29, %c0_63, %c0_64] : memref<39x16x128xf32, #tpu.memory_space<vmem>>, vector<1x3x128xf32>
    %178 = vector.shape_cast %177 : vector<1x3x128xf32> to vector<3x128xf32>
    %179 = vector.extract_strided_slice %132 {offsets = [7, 0], sizes = [1, 128], strides = [1, 1]} : vector<16x128xf32> to vector<1x128xf32>
    %180 = vector.broadcast %179 : vector<1x128xf32> to vector<3x128xf32>
    %181 = arith.mulf %178, %180 : vector<3x128xf32>
    %182 = arith.addf %176, %181 : vector<3x128xf32>
    %c30 = arith.constant 30 : index
    %c0_65 = arith.constant 0 : index
    %c0_66 = arith.constant 0 : index
    %183 = vector.load %arg2[%c30, %c0_65, %c0_66] : memref<39x16x128xf32, #tpu.memory_space<vmem>>, vector<1x3x128xf32>
    %184 = vector.shape_cast %183 : vector<1x3x128xf32> to vector<3x128xf32>
    %185 = vector.extract_strided_slice %132 {offsets = [8, 0], sizes = [1, 128], strides = [1, 1]} : vector<16x128xf32> to vector<1x128xf32>
    %186 = vector.broadcast %185 : vector<1x128xf32> to vector<3x128xf32>
    %187 = arith.mulf %184, %186 : vector<3x128xf32>
    %188 = arith.addf %182, %187 : vector<3x128xf32>
    %c31 = arith.constant 31 : index
    %c0_67 = arith.constant 0 : index
    %c0_68 = arith.constant 0 : index
    %189 = vector.load %arg2[%c31, %c0_67, %c0_68] : memref<39x16x128xf32, #tpu.memory_space<vmem>>, vector<1x3x128xf32>
    %190 = vector.shape_cast %189 : vector<1x3x128xf32> to vector<3x128xf32>
    %191 = vector.extract_strided_slice %132 {offsets = [9, 0], sizes = [1, 128], strides = [1, 1]} : vector<16x128xf32> to vector<1x128xf32>
    %192 = vector.broadcast %191 : vector<1x128xf32> to vector<3x128xf32>
    %193 = arith.mulf %190, %192 : vector<3x128xf32>
    %194 = arith.addf %188, %193 : vector<3x128xf32>
    %c32 = arith.constant 32 : index
    %c0_69 = arith.constant 0 : index
    %c0_70 = arith.constant 0 : index
    %195 = vector.load %arg2[%c32, %c0_69, %c0_70] : memref<39x16x128xf32, #tpu.memory_space<vmem>>, vector<1x3x128xf32>
    %196 = vector.shape_cast %195 : vector<1x3x128xf32> to vector<3x128xf32>
    %197 = vector.extract_strided_slice %132 {offsets = [10, 0], sizes = [1, 128], strides = [1, 1]} : vector<16x128xf32> to vector<1x128xf32>
    %198 = vector.broadcast %197 : vector<1x128xf32> to vector<3x128xf32>
    %199 = arith.mulf %196, %198 : vector<3x128xf32>
    %200 = arith.addf %194, %199 : vector<3x128xf32>
    %c33 = arith.constant 33 : index
    %c0_71 = arith.constant 0 : index
    %c0_72 = arith.constant 0 : index
    %201 = vector.load %arg2[%c33, %c0_71, %c0_72] : memref<39x16x128xf32, #tpu.memory_space<vmem>>, vector<1x3x128xf32>
    %202 = vector.shape_cast %201 : vector<1x3x128xf32> to vector<3x128xf32>
    %203 = vector.extract_strided_slice %132 {offsets = [11, 0], sizes = [1, 128], strides = [1, 1]} : vector<16x128xf32> to vector<1x128xf32>
    %204 = vector.broadcast %203 : vector<1x128xf32> to vector<3x128xf32>
    %205 = arith.mulf %202, %204 : vector<3x128xf32>
    %206 = arith.addf %200, %205 : vector<3x128xf32>
    %c34 = arith.constant 34 : index
    %c0_73 = arith.constant 0 : index
    %c0_74 = arith.constant 0 : index
    %207 = vector.load %arg2[%c34, %c0_73, %c0_74] : memref<39x16x128xf32, #tpu.memory_space<vmem>>, vector<1x3x128xf32>
    %208 = vector.shape_cast %207 : vector<1x3x128xf32> to vector<3x128xf32>
    %209 = vector.extract_strided_slice %132 {offsets = [12, 0], sizes = [1, 128], strides = [1, 1]} : vector<16x128xf32> to vector<1x128xf32>
    %210 = vector.broadcast %209 : vector<1x128xf32> to vector<3x128xf32>
    %211 = arith.mulf %208, %210 : vector<3x128xf32>
    %212 = arith.addf %206, %211 : vector<3x128xf32>
    %c35 = arith.constant 35 : index
    %c0_75 = arith.constant 0 : index
    %c0_76 = arith.constant 0 : index
    %213 = vector.load %arg2[%c35, %c0_75, %c0_76] : memref<39x16x128xf32, #tpu.memory_space<vmem>>, vector<1x3x128xf32>
    %214 = vector.shape_cast %213 : vector<1x3x128xf32> to vector<3x128xf32>
    %215 = vector.extract_strided_slice %132 {offsets = [13, 0], sizes = [1, 128], strides = [1, 1]} : vector<16x128xf32> to vector<1x128xf32>
    %216 = vector.broadcast %215 : vector<1x128xf32> to vector<3x128xf32>
    %217 = arith.mulf %214, %216 : vector<3x128xf32>
    %218 = arith.addf %212, %217 : vector<3x128xf32>
    %c36 = arith.constant 36 : index
    %c0_77 = arith.constant 0 : index
    %c0_78 = arith.constant 0 : index
    %219 = vector.load %arg2[%c36, %c0_77, %c0_78] : memref<39x16x128xf32, #tpu.memory_space<vmem>>, vector<1x3x128xf32>
    %220 = vector.shape_cast %219 : vector<1x3x128xf32> to vector<3x128xf32>
    %221 = vector.extract_strided_slice %132 {offsets = [14, 0], sizes = [1, 128], strides = [1, 1]} : vector<16x128xf32> to vector<1x128xf32>
    %222 = vector.broadcast %221 : vector<1x128xf32> to vector<3x128xf32>
    %223 = arith.mulf %220, %222 : vector<3x128xf32>
    %224 = arith.addf %218, %223 : vector<3x128xf32>
    %c37 = arith.constant 37 : index
    %c0_79 = arith.constant 0 : index
    %c0_80 = arith.constant 0 : index
    %225 = vector.load %arg2[%c37, %c0_79, %c0_80] : memref<39x16x128xf32, #tpu.memory_space<vmem>>, vector<1x3x128xf32>
    %226 = vector.shape_cast %225 : vector<1x3x128xf32> to vector<3x128xf32>
    %227 = vector.extract_strided_slice %132 {offsets = [15, 0], sizes = [1, 128], strides = [1, 1]} : vector<16x128xf32> to vector<1x128xf32>
    %228 = vector.broadcast %227 : vector<1x128xf32> to vector<3x128xf32>
    %229 = arith.mulf %226, %228 : vector<3x128xf32>
    %230 = arith.addf %224, %229 : vector<3x128xf32>
    %cst_81 = arith.constant dense<0xFF800000> : vector<128xf32>
    %231 = vector.multi_reduction <maximumf>, %230, %cst_81 [0] : vector<3x128xf32> to vector<128xf32>
    %232 = vector.shape_cast %231 : vector<128xf32> to vector<1x128xf32>
    %233 = vector.broadcast %232 : vector<1x128xf32> to vector<3x128xf32>
    %234 = arith.subf %230, %233 : vector<3x128xf32>
    %235 = math.exp %234 : vector<3x128xf32>
    %cst_82 = arith.constant dense<0.000000e+00> : vector<128xf32>
    %236 = vector.multi_reduction <add>, %235, %cst_82 [0] : vector<3x128xf32> to vector<128xf32>
    %237 = vector.shape_cast %236 : vector<128xf32> to vector<1x128xf32>
    %238 = math.log %237 : vector<1x128xf32>
    %239 = arith.addf %238, %232 : vector<1x128xf32>
    %240 = vector.broadcast %239 : vector<1x128xf32> to vector<3x128xf32>
    %241 = arith.subf %230, %240 : vector<3x128xf32>
    %242 = arith.index_cast %c0_i32 : i32 to index
    %c0_83 = arith.constant 0 : index
    %c0_84 = arith.constant 0 : index
    %243 = vector.load %arg3[%242, %c0_83, %c0_84] : memref<1x3x128xf32, #tpu.memory_space<vmem>>, vector<1x3x128xf32>
    %244 = vector.shape_cast %243 : vector<1x3x128xf32> to vector<3x128xf32>
    %245 = vector.shape_cast %241 : vector<3x128xf32> to vector<1x3x128xf32>
    tpu.vector_store %arg3[%242, %c0_83, %c0_84], %245 {strides = array<i32>} : memref<1x3x128xf32, #tpu.memory_space<vmem>>, vector<1x3x128xf32>,
    %c1_i32 = arith.constant 1 : i32
    return
  }
  func.func @transform_0(%arg0: i32) -> (i32, i32, i32) {
    %c0_i32 = arith.constant 0 : i32
    %c0_i32_0 = arith.constant 0 : i32
    %c0_i32_1 = arith.constant 0 : i32
    return %arg0, %c0_i32, %c0_i32_0 : i32, i32, i32
  }
  func.func @transform_1(%arg0: i32) -> (i32, i32, i32) {
    %c0_i32 = arith.constant 0 : i32
    %c0_i32_0 = arith.constant 0 : i32
    %c0_i32_1 = arith.constant 0 : i32
    %c0_i32_2 = arith.constant 0 : i32
    return %c0_i32, %c0_i32_0, %c0_i32_1 : i32, i32, i32
  }
  func.func @transform_2(%arg0: i32) -> (i32, i32, i32) {
    %c0_i32 = arith.constant 0 : i32
    %c0_i32_0 = arith.constant 0 : i32
    %c0_i32_1 = arith.constant 0 : i32
    return %arg0, %c0_i32, %c0_i32_0 : i32, i32, i32
  }
}

</mosaic_0001>

<bundles_post_ra>
// kernel: dqn_forward.1
= control target key start
LH: loop header
LB: loop body
LE: loop exit
PB: predicated region body
PF: predicated region fallthrough
CT: control target
= control target key end

     0   :  { %7 = vsyncpa [#allocation3], 0  ;;  %s344_s12 = smov [#allocation2]   ;;  %s345_s14 = smov 128   ;;  %s381_s0 = inlined_call_operand.vmem [shape: f32[1,4,128], index: 0, kind: input, shape index: {}]   ;;  %s382_s1 = inlined_call_operand.hbm [shape: f32[39,16,128], index: 1, kind: input, shape index: {}]   ;;  %s383_s2 = inlined_call_operand.vmem [shape: f32[1,3,128], index: 2, kind: output, shape index: {}]  }
   0x1   :  { %s14_s11 = sshll.u32 %s382_s1, 4  ;;  %s16_s13 = sshll.u32 %s344_s12, 4  ;;  %s15_s11 = int_to_ptr.hbm [resolvable:$true] %s14_s11  ;;  %s17_s13 = int_to_ptr.vmem [resolvable:$true] %s16_s13 }
   0x2   :  { %s346_s15 = smov 8  }
   0x3   :  { %22 = dma.hbm_to_vmem [thread:$0]  %s15_s11, 9984, %s17_s13, [#allocation3], %s345_s14, %s345_s14, %s346_s15  }
   0x4   :  { %342 = dma.done.wait [#allocation3], 9984  }
   0x5   :  { %343 = vsyncadd [#allocation3], 4294957312  ;;  %v27_v0 = vld [vmem:[%s381_s0] sm:$0xf]  ;;  %v32_v3 = vld [vmem:[#allocation2 + $0x8] sm:$0xff]  ;;  %vm283_vm0 = vcmask 1042432  }
   0x6   :  { %v29_v1 = vld [vmem:[#allocation2 + $0x40] sm:$0xff]  ;;  %v33_v4 = vperm.slane %v27_v0, 0  ;;  %v39_v5 = vld [vmem:[#allocation2 + $0x10] sm:$0xff]  ;;  %v41_v6 = vperm.slane %v27_v0, 1  ;;  %v49_v7 = vperm.slane %v27_v0, 2  ;;  %v30_v8 = vld [vmem:[#allocation2 + $0x48] sm:$0xff] }
   0x7   :  { %v31_v2 = vld [vmem:[#allocation2] sm:$0xff]  ;;  %v40_v9 = vld [vmem:[#allocation2 + $0x18] sm:$0xff]  ;;  %v57_v14 = vperm.slane %v27_v0, 3  ;;  %v55_v16 = vld [vmem:[#allocation2 + $0x30] sm:$0xff] }
   0x8   :  { %v47_v10 = vld [vmem:[#allocation2 + $0x20] sm:$0xff]  ;;  %v34_v11 = vmul.f32 %v33_v4, %v31_v2  ;;  %v35_v12 = vmul.f32 %v33_v4, %v32_v3  ;;  %v42_v13 = vmul.f32 %v41_v6, %v39_v5  ;;  %v43_v15 = vmul.f32 %v41_v6, %v40_v9  ;;  %v48_v19 = vld [vmem:[#allocation2 + $0x28] sm:$0xff]  ;;  %v56_v26 = vld [vmem:[#allocation2 + $0x38] sm:$0xff] }
   0x9   :  { %v50_v20 = vmul.f32 %v49_v7, %v47_v10  ;;  %v58_v22 = vmul.f32 %v57_v14, %v55_v16  ;;  %v51_v24 = vmul.f32 %v49_v7, %v48_v19  ;;  %v59_v29 = vmul.f32 %v57_v14, %v56_v26  ;;  %v70_v32 = vld [vmem:[#allocation2 + $0x50] sm:$0xff]  ;;  %v71_v34 = vld [vmem:[#allocation2 + $0x58] sm:$0xff]  ;;  %v78_v35 = vld [vmem:[#allocation2 + $0x60] sm:$0xff] }
   0xa   :  { %v36_v17 = vadd.f32 %v34_v11, %v29_v1  ;;  %v37_v18 = vadd.f32 %v35_v12, %v30_v8  ;;  %v79_v36 = vld [vmem:[#allocation2 + $0x68] sm:$0xff]  ;;  %v67_v37 = vld [vmem:[#allocation2 + $0x150] sm:$0xff]  ;;  %v68_v41 = vld [vmem:[#allocation2 + $0x158] sm:$0xff] }
   0xb   :  { %v86_v42 = vld [vmem:[#allocation2 + $0x70] sm:$0xff]  ;;  %v87_v43 = vld [vmem:[#allocation2 + $0x78] sm:$0xff]  ;;  %v94_v50 = vld [vmem:[#allocation2 + $0x80] sm:$0xff] }
   0xc   :  { %v44_v21 = vadd.f32 %v42_v13, %v36_v17  ;;  %v45_v23 = vadd.f32 %v43_v15, %v37_v18  ;;  %v95_v51 = vld [vmem:[#allocation2 + $0x88] sm:$0xff]  ;;  %v102_v57 = vld [vmem:[#allocation2 + $0x90] sm:$0xff]  ;;  %v103_v58 = vld [vmem:[#allocation2 + $0x98] sm:$0xff] }
   0xd   :  { %v110_v1 = vld [vmem:[#allocation2 + $0xa0] sm:$0xff]  ;;  %v111_v2 = vld [vmem:[#allocation2 + $0xa8] sm:$0xff]  ;;  %v118_v8 = vld [vmem:[#allocation2 + $0xb0] sm:$0xff] }
   0xe   :  { %v52_v25 = vadd.f32 %v50_v20, %v44_v21  ;;  %v53_v28 = vadd.f32 %v51_v24, %v45_v23  ;;  %v119_v9 = vld [vmem:[#allocation2 + $0xb8] sm:$0xff]  ;;  %v126_v15 = vld [vmem:[#allocation2 + $0xc0] sm:$0xff]  ;;  %v127_v17 = vld [vmem:[#allocation2 + $0xc8] sm:$0xff] }
   0xf   :  { %v134_v23 = vld [vmem:[#allocation2 + $0xd0] sm:$0xff]  ;;  %v135_v24 = vld [vmem:[#allocation2 + $0xd8] sm:$0xff] }
  0x10   :  { %v60_v27 = vadd.f32 %v58_v22, %v52_v25  ;;  %v61_v33 = vadd.f32 %v59_v29, %v53_v28  ;;  %v142_v29 = vld [vmem:[#allocation2 + $0xe0] sm:$0xff] }
  0x12   :  { %v62_v30 = vmul.f32 0.01, %v60_v27  ;;  %v63_v49 = vmul.f32 0.01, %v61_v33 }
  0x14   :  { %v64_v31 = vmax.f32 %v60_v27, %v62_v30  ;;  %v368_v0 = vmax.f32 %v61_v33, %v63_v49  ;;  %v143_v30 = vld [vmem:[#allocation2 + $0xe8] sm:$0xff] }
  0x16   :  { %v72_v38 = vperm.slane %v64_v31, 0  ;;  %v80_v39 = vperm.slane %v64_v31, 1  ;;  %v88_v40 = vperm.slane %v64_v31, 2  ;;  %v96_v44 = vperm.slane %v64_v31, 3 }
  0x17   :  { %v104_v52 = vperm.slane %v64_v31, 4  ;;  %v112_v59 = vperm.slane %v64_v31, 5  ;;  %v120_v3 = vperm.slane %v64_v31, 6  ;;  %v128_v10 = vperm.slane %v64_v31, 7 }
  0x18   :  { %v73_v45 = vmul.f32 %v72_v38, %v70_v32  ;;  %v74_v46 = vmul.f32 %v72_v38, %v71_v34  ;;  %v81_v47 = vmul.f32 %v80_v39, %v78_v35  ;;  %v82_v48 = vmul.f32 %v80_v39, %v79_v36  ;;  %v150_v36 = vld [vmem:[#allocation2 + $0xf0] sm:$0xff] }
  0x19   :  { %v89_v55 = vmul.f32 %v88_v40, %v86_v42  ;;  %v90_v56 = vmul.f32 %v88_v40, %v87_v43  ;;  %v97_v62 = vmul.f32 %v96_v44, %v94_v50  ;;  %v98_v63 = vmul.f32 %v96_v44, %v95_v51  ;;  %v158_v43 = vld [vmem:[#allocation2 + $0x100] sm:$0xff]  ;;  %v159_v44 = vld [vmem:[#allocation2 + $0x108] sm:$0xff]  ;;  %v166_v50 = vld [vmem:[#allocation2 + $0x110] sm:$0xff] }
  0x1a   :  { %v75_v53 = vadd.f32 %v73_v45, %v67_v37  ;;  %v76_v54 = vadd.f32 %v74_v46, %v68_v41  ;;  %v105_v6 = vmul.f32 %v104_v52, %v102_v57  ;;  %v106_v7 = vmul.f32 %v104_v52, %v103_v58  ;;  %v151_v37 = vld [vmem:[#allocation2 + $0xf8] sm:$0xff]  ;;  %v174_v58 = vld [vmem:[#allocation2 + $0x120] sm:$0xff] }
  0x1b   :  { %v113_v13 = vmul.f32 %v112_v59, %v110_v1  ;;  %v114_v14 = vmul.f32 %v112_v59, %v111_v2  ;;  %v121_v16 = vmul.f32 %v120_v3, %v118_v8  ;;  %v122_v20 = vmul.f32 %v120_v3, %v119_v9  ;;  %v167_v51 = vld [vmem:[#allocation2 + $0x118] sm:$0xff]  ;;  %v182_v1 = vld [vmem:[#allocation2 + $0x130] sm:$0xff] }
  0x1c   :  { %v83_v60 = vadd.f32 %v81_v47, %v75_v53  ;;  %v84_v61 = vadd.f32 %v82_v48, %v76_v54  ;;  %v136_v21 = vperm.slane %v368_v0, 0  ;;  %v129_v22 = vmul.f32 %v128_v10, %v126_v15 }
  0x1d   :  { %v130_v27 = vmul.f32 %v128_v10, %v127_v17  ;;  %v144_v28 = vperm.slane %v368_v0, 1  ;;  %v152_v31 = vperm.slane %v368_v0, 2  ;;  %v160_v38 = vperm.slane %v368_v0, 3  ;;  %v191_v17 = vld [vmem:[#allocation2 + $0x148] sm:$0xff] }
  0x1e   :  { %v91_v4 = vadd.f32 %v89_v55, %v83_v60  ;;  %v92_v5 = vadd.f32 %v90_v56, %v84_v61  ;;  %v137_v34 = vmul.f32 %v136_v21, %v134_v23  ;;  %v138_v35 = vmul.f32 %v136_v21, %v135_v24  ;;  %v204_v23 = vld [vmem:[#allocation2 + $0x160] sm:$0x7]  ;;  %v209_v24 = vld [vmem:[#allocation2 + $0x170] sm:$0x7] }
  0x1f   :  { %v145_v41 = vmul.f32 %v144_v28, %v142_v29  ;;  %v146_v42 = vmul.f32 %v144_v28, %v143_v30  ;;  %v168_v45 = vperm.slane %v368_v0, 4  ;;  %v153_v48 = vmul.f32 %v152_v31, %v150_v36  ;;  %v202_v28 = vld [vmem:[#allocation2 + $0x260] sm:$0x7] }
  0x20   :  { %v99_v11 = vadd.f32 %v97_v62, %v91_v4  ;;  %v100_v12 = vadd.f32 %v98_v63, %v92_v5  ;;  %v154_v49 = vmul.f32 %v152_v31, %v151_v37  ;;  %v176_v52 = vperm.slane %v368_v0, 5  ;;  %v175_v63 = vld [vmem:[#allocation2 + $0x128] sm:$0xff]  ;;  %v214_v29 = vld [vmem:[#allocation2 + $0x180] sm:$0x7] }
  0x21   :  { %v161_v55 = vmul.f32 %v160_v38, %v158_v43  ;;  %v162_v56 = vmul.f32 %v160_v38, %v159_v44  ;;  %v169_v57 = vmul.f32 %v168_v45, %v166_v50  ;;  %v170_v61 = vmul.f32 %v168_v45, %v167_v51  ;;  %v224_v38 = vld [vmem:[#allocation2 + $0x1a0] sm:$0x7]  ;;  %v239_v51 = vld [vmem:[#allocation2 + $0x1d0] sm:$0x7] }
  0x22   :  { %v107_v18 = vadd.f32 %v105_v6, %v99_v11  ;;  %v108_v19 = vadd.f32 %v106_v7, %v100_v12  ;;  %v184_v62 = vperm.slane %v368_v0, 6  ;;  %v177_v4 = vmul.f32 %v176_v52, %v174_v58  ;;  %v190_v6 = vld [vmem:[#allocation2 + $0x140] sm:$0xff]  ;;  %v183_v11 = vld [vmem:[#allocation2 + $0x138] sm:$0xff] }
  0x23   :  { %v192_v5 = vperm.slane %v368_v0, 7  ;;  %v178_v9 = vmul.f32 %v176_v52, %v175_v63  ;;  %v254_v63 = vld [vmem:[#allocation2 + $0x200] sm:$0x7] }
  0x24   :  { %v115_v25 = vadd.f32 %v113_v13, %v107_v18  ;;  %v116_v26 = vadd.f32 %v114_v14, %v108_v19  ;;  %v185_v10 = vmul.f32 %v184_v62, %v182_v1  ;;  %v186_v15 = vmul.f32 %v184_v62, %v183_v11 }
  0x25   :  { %v193_v13 = vmul.f32 %v192_v5, %v190_v6 }
  0x26   :  { %v123_v32 = vadd.f32 %v121_v16, %v115_v25  ;;  %v124_v33 = vadd.f32 %v122_v20, %v116_v26  ;;  %v194_v20 = vmul.f32 %v192_v5, %v191_v17 }
  0x28   :  { %v131_v39 = vadd.f32 %v129_v22, %v123_v32  ;;  %v132_v40 = vadd.f32 %v130_v27, %v124_v33  ;;  %v219_v33 = vld [vmem:[#allocation2 + $0x190] sm:$0x7] }
  0x2a   :  { %v139_v46 = vadd.f32 %v137_v34, %v131_v39  ;;  %v140_v47 = vadd.f32 %v138_v35, %v132_v40 }
  0x2c   :  { %v147_v53 = vadd.f32 %v145_v41, %v139_v46  ;;  %v148_v54 = vadd.f32 %v146_v42, %v140_v47  ;;  %v229_v42 = vld [vmem:[#allocation2 + $0x1b0] sm:$0x7]  ;;  %v234_v47 = vld [vmem:[#allocation2 + $0x1c0] sm:$0x7] }
  0x2e   :  { %v155_v59 = vadd.f32 %v153_v48, %v147_v53  ;;  %v156_v60 = vadd.f32 %v154_v49, %v148_v54 }
  0x30   :  { %v163_v2 = vadd.f32 %v161_v55, %v155_v59  ;;  %v164_v3 = vadd.f32 %v162_v56, %v156_v60  ;;  %v244_v55 = vld [vmem:[#allocation2 + $0x1e0] sm:$0x7]  ;;  %v249_v59 = vld [vmem:[#allocation2 + $0x1f0] sm:$0x7] }
  0x32   :  { %v171_v7 = vadd.f32 %v169_v57, %v163_v2  ;;  %v172_v8 = vadd.f32 %v170_v61, %v164_v3 }
  0x34   :  { %v179_v12 = vadd.f32 %v177_v4, %v171_v7  ;;  %v180_v14 = vadd.f32 %v178_v9, %v172_v8  ;;  %v259_v4 = vld [vmem:[#allocation2 + $0x210] sm:$0x7]  ;;  %v264_v8 = vld [vmem:[#allocation2 + $0x220] sm:$0x7] }
  0x36   :  { %v187_v16 = vadd.f32 %v185_v10, %v179_v12  ;;  %v188_v19 = vadd.f32 %v186_v15, %v180_v14  ;;  %v269_v12 = vld [vmem:[#allocation2 + $0x230] sm:$0x7] }
  0x38   :  { %v195_v18 = vadd.f32 %v193_v13, %v187_v16  ;;  %v196_v0 = vadd.f32 %v194_v20, %v188_v19  ;;  %v274_v16 = vld [vmem:[#allocation2 + $0x240] sm:$0x7]  ;;  %v279_v20 = vld [vmem:[#allocation2 + $0x250] sm:$0x7] }
  0x3a   :  { %v197_v21 = vmul.f32 0.01, %v195_v18  ;;  %v198_v34 = vmul.f32 0.01, %v196_v0 }
  0x3c   :  { %v199_v22 = vmax.f32 %v195_v18, %v197_v21  ;;  %v200_v43 = vmax.f32 %v196_v0, %v198_v34 }
  0x3e   :  { %v205_v25 = vperm.slane %v199_v22, 0  ;;  %v210_v26 = vperm.slane %v199_v22, 1  ;;  %v215_v27 = vperm.slane %v199_v22, 2  ;;  %v220_v32 = vperm.slane %v199_v22, 3 }
  0x3f   :  { %v225_v37 = vperm.slane %v199_v22, 4  ;;  %v230_v41 = vperm.slane %v199_v22, 5  ;;  %v235_v46 = vperm.slane %v199_v22, 6  ;;  %v240_v50 = vperm.slane %v199_v22, 7 }
  0x40   :  { %v206_v30 = vmul.f32 %v205_v25, %v204_v23  ;;  %v211_v31 = vmul.f32 %v210_v26, %v209_v24  ;;  %v216_v36 = vmul.f32 %v215_v27, %v214_v29  ;;  %v221_v40 = vmul.f32 %v220_v32, %v219_v33 }
  0x41   :  { %v226_v45 = vmul.f32 %v225_v37, %v224_v38  ;;  %v231_v49 = vmul.f32 %v230_v41, %v229_v42  ;;  %v236_v53 = vmul.f32 %v235_v46, %v234_v47  ;;  %v245_v54 = vperm.slane %v200_v43, 0 }
  0x42   :  { %v207_v35 = vadd.f32 %v206_v30, %v202_v28  ;;  %v241_v57 = vmul.f32 %v240_v50, %v239_v51  ;;  %v250_v58 = vperm.slane %v200_v43, 1  ;;  %v255_v62 = vperm.slane %v200_v43, 2 }
  0x43   :  { %v246_v61 = vmul.f32 %v245_v54, %v244_v55  ;;  %v260_v3 = vperm.slane %v200_v43, 3  ;;  %v265_v7 = vperm.slane %v200_v43, 4  ;;  %v270_v11 = vperm.slane %v200_v43, 5 }
  0x44   :  { %v212_v39 = vadd.f32 %v211_v31, %v207_v35  ;;  %v251_v2 = vmul.f32 %v250_v58, %v249_v59  ;;  %v256_v6 = vmul.f32 %v255_v62, %v254_v63  ;;  %v275_v15 = vperm.slane %v200_v43, 6 }
  0x45   :  { %v261_v10 = vmul.f32 %v260_v3, %v259_v4  ;;  %v266_v14 = vmul.f32 %v265_v7, %v264_v8  ;;  %v271_v18 = vmul.f32 %v270_v11, %v269_v12  ;;  %v280_v19 = vperm.slane %v200_v43, 7 }
  0x46   :  { %v217_v44 = vadd.f32 %v216_v36, %v212_v39  ;;  %v276_v22 = vmul.f32 %v275_v15, %v274_v16 }
  0x47   :  { %v281_v24 = vmul.f32 %v280_v19, %v279_v20 }
  0x48   :  { %v222_v48 = vadd.f32 %v221_v40, %v217_v44 }
  0x4a   :  { %v227_v52 = vadd.f32 %v226_v45, %v222_v48 }
  0x4c   :  { %v232_v56 = vadd.f32 %v231_v49, %v227_v52 }
  0x4e   :  { %v237_v60 = vadd.f32 %v236_v53, %v232_v56 }
  0x50   :  { %v242_v1 = vadd.f32 %v241_v57, %v237_v60 }
  0x52   :  { %v247_v5 = vadd.f32 %v246_v61, %v242_v1 }
  0x54   :  { %v252_v9 = vadd.f32 %v251_v2, %v247_v5 }
  0x56   :  { %v257_v13 = vadd.f32 %v256_v6, %v252_v9 }
  0x58   :  { %v262_v17 = vadd.f32 %v261_v10, %v257_v13 }
  0x5a   :  { %v267_v21 = vadd.f32 %v266_v14, %v262_v17 }
  0x5c   :  { %v272_v23 = vadd.f32 %v271_v18, %v267_v21 }
  0x5e   :  { %v277_v0 = vadd.f32 %v276_v22, %v272_v23 }
  0x60   :  { %v282_v25 = vadd.f32 %v281_v24, %v277_v0 }
  0x62   :  { %v284_v26 = vsel %vm283_vm0, %v282_v25, -inf }
  0x63   :  { %v285_v27 = vrot.slane %v284_v26, 4 }
  0x65   :  { %v286_v28 = vmax.f32 %v284_v26, %v285_v27 }
  0x67   :  { %v287_v29 = vrot.slane %v286_v28, 2 }
  0x69   :  { %v288_v30 = vmax.f32 %v286_v28, %v287_v29 }
  0x6b   :  { %v289_v31 = vrot.slane %v288_v30, 1 }
  0x6d   :  { %v290_v32 = vmax.f32 %v288_v30, %v289_v31 }
  0x6f   :  { %v291_v33 = vsub.f32 %v282_v25, %v290_v32 }
  0x71   :  { %v292_v34 = vmul.f32 1.442695, %v291_v33 }
  0x73   :  { %314 = vpow2.f32 %v292_v34 }
  0x79   :  { %v315_v35 = vpop.eup %314 }
  0x7a   :  { %v294_v36 = vsel %vm283_vm0, %v315_v35, 0.0 }
  0x7b   :  { %v295_v37 = vrot.slane %v294_v36, 4 }
  0x7d   :  { %v296_v38 = vadd.f32 %v295_v37, %v294_v36 }
  0x7f   :  { %v297_v39 = vrot.slane %v296_v38, 2 }
  0x81   :  { %v298_v40 = vadd.f32 %v297_v39, %v296_v38 }
  0x83   :  { %v299_v41 = vrot.slane %v298_v40, 1 }
  0x85   :  { %v300_v42 = vadd.f32 %v299_v41, %v298_v40 }
  0x87   :  { %316 = vlog2.f32 %v300_v42 }
  0x8d   :  { %v317_v43 = vpop.eup %316 }
  0x8e   :  { %v302_v44 = vmul.f32 0.6931472, %v317_v43 }
  0x90   :  { %v303_v45 = vadd.f32 %v302_v44, %v290_v32 }
  0x92   :  { %v304_v46 = vsub.f32 %v282_v25, %v303_v45 }
  0x94   :  { %305 = vst [vmem:[%s383_s2] sm:$0x7] %v304_v46 }
  0x95   :  { %310 = vsyncpa [#allocation3], 1 }

</bundles_post_ra>
